<compile_context>
chip_gen: v5e
topology: v5e:2x2
jax: 0.10.0
libtpu: 0.0.40
codegen_flags: <defaults>
</compile_context>

<pallas_src>
import jax
import jax.numpy as jnp
from jax.experimental import pallas as pl
from jax.experimental.pallas import tpu as pltpu


def dqn_kernel(x_ref, w1_ref, b1_ref, w2_ref, b2_ref, w3_ref, b3_ref, o_ref):
    # Whole MLP hot path runs on the MXU/VPU inside one kernel invocation.
    x = x_ref[...].astype(jnp.bfloat16)                                # f32 in HBM, bf16 cast on VPU (free slot)
    h1 = jnp.dot(x, w1_ref[...], preferred_element_type=jnp.float32) + b1_ref[...]
    h1 = jnp.maximum(h1, 0.0).astype(jnp.bfloat16)                     # f32 epilogue, bf16 for next MXU op
    h2 = jnp.dot(h1, w2_ref[...], preferred_element_type=jnp.float32) + b2_ref[...]
    h2 = jnp.maximum(h2, 0.0).astype(jnp.bfloat16)
    out = jnp.dot(h2, w3_ref[...], preferred_element_type=jnp.float32) + b3_ref[...]
    o_ref[...] = out.astype(o_ref.dtype)                               # bf16, lane-dense (A padded to 128)


def _round_up(n, m):
    return ((n + m - 1) // m) * m


def prepare_params(params):
    """One-time per-parameter-set prep (cast to bf16, lane-pad the action dim).

    DQN calls forward thousands of times with the same params; doing this once keeps
    per-call wrapper work to zero XLA ops besides the Pallas call + final slice.
    """
    A = params["w3"].shape[1]
    A_pad = _round_up(A, 128)
    w3 = params["w3"]
    b3 = params["b3"]
    if A_pad != A:
        w3 = jnp.pad(w3, ((0, 0), (0, A_pad - A)))   # zero columns -> zero Q padding
        b3 = jnp.pad(b3, ((0, 0), (0, A_pad - A)))
    prepared = {
        "w1": params["w1"].astype(jnp.bfloat16),
        "b1": params["b1"].astype(jnp.float32),
        "w2": params["w2"].astype(jnp.bfloat16),
        "b2": params["b2"].astype(jnp.float32),
        "w3": w3.astype(jnp.bfloat16),
        "b3": b3.astype(jnp.float32),
        "n_actions": A,
    }
    return prepared


def dqn_forward(x, prepped, *, batch_tile=1024):
    """x: [B, input_dims] float32.  prepped: output of prepare_params()."""
    B, D = x.shape
    w1, b1 = prepped["w1"], prepped["b1"]
    w2, b2 = prepped["w2"], prepped["b2"]
    w3, b3 = prepped["w3"], prepped["b3"]
    H = w1.shape[1]
    A_pad = w3.shape[1]
    A = prepped["n_actions"]

    # Batch tile: multiple of 16 (bf16 sublane packing), capped by batch_tile.
    tile = min(_round_up(batch_tile, 16), _round_up(B, 16))
    num_steps = pl.cdiv(B, tile)
    if num_steps == 1 and B >= 32:
        # v7x megacore: make sure there are >= 2 parallel grid steps to shard across
        # both TensorCores. Extra 0.35 us step overhead is negligible at these sizes.
        tile = _round_up(pl.cdiv(B, 2), 16)
        num_steps = pl.cdiv(B, tile)
    grid = (num_steps,)

    def rep(i):  # weights / biases: same full block every grid step (VMEM-resident)
        return (0, 0)

    cost = pl.CostEstimate(
        flops=2 * B * (D * H + H * H + H * A_pad),
        transcendentals=0,
        bytes_accessed=(
            x.size * 4
            + (w1.size + w2.size + w3.size) * 2
            + (b1.size + b2.size + b3.size) * 4
            + B * A_pad * 2
        ),
    )

    out = pl.pallas_call(
        dqn_kernel,
        out_shape=jax.ShapeDtypeStruct((B, A_pad), jnp.bfloat16),
        grid_spec=pltpu.PrefetchScalarGridSpec(
            num_scalar_prefetch=0,
            grid=grid,
            in_specs=[
                pl.BlockSpec((tile, D), lambda i: (i, 0)),   # x tile (f32, cast in-kernel)
                pl.BlockSpec((D, H), rep),                   # w1 (bf16)
                pl.BlockSpec((1, H), rep),                   # b1 (f32)
                pl.BlockSpec((H, H), rep),                   # w2 (bf16)
                pl.BlockSpec((1, H), rep),                   # b2 (f32)
                pl.BlockSpec((H, A_pad), rep),               # w3 (bf16, lane-padded)
                pl.BlockSpec((1, A_pad), rep),               # b3 (f32, lane-padded)
            ],
            out_specs=pl.BlockSpec((tile, A_pad), lambda i: (i, 0)),
        ),
        compiler_params=pltpu.CompilerParams(
            dimension_semantics=("parallel",),
        ),
        cost_estimate=cost,
    )(x, w1, b1, w2, b2, w3, b3)

    # Slice away the lane padding; return f32 Q-values (PyTorch-like API). The slice
    # and the cast fuse into one tiny XLA op reading half the bytes of the old f32 path.
    return out[:, :A].astype(jnp.float32)


def init_params(key, input_dims, n_actions, hidden=128):
    """Deterministic synthetic init (uniform, PyTorch-Linear-style bounds)."""
    ks = jax.random.split(key, 6)

    def linear(kw, kb, fan_in, fan_out):
        bound = 1.0 / jnp.sqrt(fan_in)
        w = jax.random.uniform(kw, (fan_in, fan_out), jnp.float32, -bound, bound)
        b = jax.random.uniform(kb, (1, fan_out), jnp.float32, -bound, bound)
        return w, b

    w1, b1 = linear(ks[0], ks[1], input_dims, hidden)
    w2, b2 = linear(ks[2], ks[3], hidden, hidden)
    w3, b3 = linear(ks[4], ks[5], hidden, n_actions)
    return {"w1": w1, "b1": b1, "w2": w2, "b2": b2, "w3": w3, "b3": b3}


def dqn_forward_ref_f32(x, p):
    """PyTorch-semantics (pure f32) reference."""
    h1 = jnp.maximum(x @ p["w1"] + p["b1"], 0.0)
    h2 = jnp.maximum(h1 @ p["w2"] + p["b2"], 0.0)
    return h2 @ p["w3"] + p["b3"]


def dqn_forward_ref_bf16(x, p):
    """Mirrors the kernel's bf16-operand / f32-accumulate / bf16-store path."""
    xb = x.astype(jnp.bfloat16)
    h1 = jnp.dot(xb, p["w1"].astype(jnp.bfloat16),
                 preferred_element_type=jnp.float32) + p["b1"]
    h1 = jnp.maximum(h1, 0.0).astype(jnp.bfloat16)
    h2 = jnp.dot(h1, p["w2"].astype(jnp.bfloat16),
                 preferred_element_type=jnp.float32) + p["b2"]
    h2 = jnp.maximum(h2, 0.0).astype(jnp.bfloat16)
    out = jnp.dot(h2, p["w3"].astype(jnp.bfloat16),
                  preferred_element_type=jnp.float32) + p["b3"]
    return out.astype(jnp.bfloat16).astype(jnp.float32)


if __name__ == "__main__":
    key = jax.random.PRNGKey(0)
    k_param, k_x = jax.random.split(key)

    batch = 8
    input_dims = 16
    n_actions = 4

    params = init_params(k_param, input_dims, n_actions)
    prepped = prepare_params(params)   # one-time weight prep (cached across calls)
    x = jax.random.normal(k_x, (batch, input_dims), jnp.float32)

    out = dqn_forward(x, prepped)
    out = jax.block_until_ready(out)
    assert out.shape == (batch, n_actions)

    # Tight check against a reference that follows the kernel's bf16/f32 path.
    ref_matched = dqn_forward_ref_bf16(x, params)
    assert jnp.allclose(out, ref_matched, atol=1e-2, rtol=1e-2)

    # Loose check against the pure-f32 PyTorch-semantics reference.
    ref_f32 = dqn_forward_ref_f32(x, params)
    assert jnp.allclose(out, ref_f32, atol=5e-2, rtol=5e-2)

    print("KERNEL_OK")
</pallas_src>

<mosaic_0001>
module attributes {stable_mosaic.version = 11 : i64} {
  func.func @dqn_kernel(%arg0: i32, %arg1: memref<16x16xf32, #tpu.memory_space<vmem>>, %arg2: memref<16x128xbf16, #tpu.memory_space<vmem>>, %arg3: memref<1x128xf32, #tpu.memory_space<vmem>>, %arg4: memref<128x128xbf16, #tpu.memory_space<vmem>>, %arg5: memref<1x128xf32, #tpu.memory_space<vmem>>, %arg6: memref<128x128xbf16, #tpu.memory_space<vmem>>, %arg7: memref<1x128xf32, #tpu.memory_space<vmem>>, %arg8: memref<16x128xbf16, #tpu.memory_space<vmem>>) attributes {dimension_semantics = [#tpu.dimension_semantics<parallel>], iteration_bounds = array<i64: 1>, scalar_prefetch = 0 : i64, scratch_operands = 0 : i64, tpu.core_type = #tpu.core_type<tc>, window_params = [{transform_indices = @transform_0, window_bounds = array<i64: 16, 16>}, {pipeline_mode = #tpu.pipeline_mode<synchronous>, transform_indices = @transform_1, window_bounds = array<i64: 16, 128>}, {pipeline_mode = #tpu.pipeline_mode<synchronous>, transform_indices = @transform_2, window_bounds = array<i64: 1, 128>}, {pipeline_mode = #tpu.pipeline_mode<synchronous>, transform_indices = @transform_3, window_bounds = array<i64: 128, 128>}, {pipeline_mode = #tpu.pipeline_mode<synchronous>, transform_indices = @transform_4, window_bounds = array<i64: 1, 128>}, {pipeline_mode = #tpu.pipeline_mode<synchronous>, transform_indices = @transform_5, window_bounds = array<i64: 128, 128>}, {pipeline_mode = #tpu.pipeline_mode<synchronous>, transform_indices = @transform_6, window_bounds = array<i64: 1, 128>}, {transform_indices = @transform_7, window_bounds = array<i64: 16, 128>}]} {
    %c0 = arith.constant 0 : index
    %c0_0 = arith.constant 0 : index
    %0 = vector.load %arg1[%c0, %c0_0] : memref<16x16xf32, #tpu.memory_space<vmem>>, vector<16x16xf32>
    %1 = arith.truncf %0 : vector<16x16xf32> to vector<16x16xbf16>
    %c0_1 = arith.constant 0 : index
    %c0_2 = arith.constant 0 : index
    %2 = vector.load %arg2[%c0_1, %c0_2] : memref<16x128xbf16, #tpu.memory_space<vmem>>, vector<16x128xbf16>
    %cst = arith.constant dense<0.000000e+00> : vector<16x128xf32>
    %3 = tpu.matmul %1, %2, %cst {dimension_numbers = #tpu.dot_dimension_numbers<[1], [0], [0], [1], [0, 0, 1, 1], [], []>} : vector<16x16xbf16>, vector<16x128xbf16>, vector<16x128xf32> -> vector<16x128xf32>
    %c0_3 = arith.constant 0 : index
    %c0_4 = arith.constant 0 : index
    %4 = vector.load %arg3[%c0_3, %c0_4] : memref<1x128xf32, #tpu.memory_space<vmem>>, vector<1x128xf32>
    %5 = vector.broadcast %4 : vector<1x128xf32> to vector<16x128xf32>
    %6 = arith.addf %3, %5 : vector<16x128xf32>
    %cst_5 = arith.constant 0.000000e+00 : f32
    %7 = vector.broadcast %cst_5 : f32 to vector<16x128xf32>
    %8 = arith.maximumf %6, %7 : vector<16x128xf32>
    %9 = arith.truncf %8 : vector<16x128xf32> to vector<16x128xbf16>
    %c0_6 = arith.constant 0 : index
    %c0_7 = arith.constant 0 : index
    %10 = vector.load %arg4[%c0_6, %c0_7] : memref<128x128xbf16, #tpu.memory_space<vmem>>, vector<128x128xbf16>
    %cst_8 = arith.constant dense<0.000000e+00> : vector<16x128xf32>
    %11 = tpu.matmul %9, %10, %cst_8 {dimension_numbers = #tpu.dot_dimension_numbers<[1], [0], [0], [1], [0, 0, 1, 1], [], []>} : vector<16x128xbf16>, vector<128x128xbf16>, vector<16x128xf32> -> vector<16x128xf32>
    %c0_9 = arith.constant 0 : index
    %c0_10 = arith.constant 0 : index
    %12 = vector.load %arg5[%c0_9, %c0_10] : memref<1x128xf32, #tpu.memory_space<vmem>>, vector<1x128xf32>
    %13 = vector.broadcast %12 : vector<1x128xf32> to vector<16x128xf32>
    %14 = arith.addf %11, %13 : vector<16x128xf32>
    %cst_11 = arith.constant 0.000000e+00 : f32
    %15 = vector.broadcast %cst_11 : f32 to vector<16x128xf32>
    %16 = arith.maximumf %14, %15 : vector<16x128xf32>
    %17 = arith.truncf %16 : vector<16x128xf32> to vector<16x128xbf16>
    %c0_12 = arith.constant 0 : index
    %c0_13 = arith.constant 0 : index
    %18 = vector.load %arg6[%c0_12, %c0_13] : memref<128x128xbf16, #tpu.memory_space<vmem>>, vector<128x128xbf16>
    %cst_14 = arith.constant dense<0.000000e+00> : vector<16x128xf32>
    %19 = tpu.matmul %17, %18, %cst_14 {dimension_numbers = #tpu.dot_dimension_numbers<[1], [0], [0], [1], [0, 0, 1, 1], [], []>} : vector<16x128xbf16>, vector<128x128xbf16>, vector<16x128xf32> -> vector<16x128xf32>
    %c0_15 = arith.constant 0 : index
    %c0_16 = arith.constant 0 : index
    %20 = vector.load %arg7[%c0_15, %c0_16] : memref<1x128xf32, #tpu.memory_space<vmem>>, vector<1x128xf32>
    %21 = vector.broadcast %20 : vector<1x128xf32> to vector<16x128xf32>
    %22 = arith.addf %19, %21 : vector<16x128xf32>
    %23 = arith.truncf %22 : vector<16x128xf32> to vector<16x128xbf16>
    %c0_17 = arith.constant 0 : index
    %c0_18 = arith.constant 0 : index
    %24 = vector.load %arg8[%c0_17, %c0_18] : memref<16x128xbf16, #tpu.memory_space<vmem>>, vector<16x128xbf16>
    tpu.vector_store %arg8[%c0_17, %c0_18], %23 {strides = array<i32>} : memref<16x128xbf16, #tpu.memory_space<vmem>>, vector<16x128xbf16>,
    return
  }
  func.func @transform_0(%arg0: i32) -> (i32, i32) {
    %c0_i32 = arith.constant 0 : i32
    %c0_i32_0 = arith.constant 0 : i32
    return %arg0, %c0_i32 : i32, i32
  }
  func.func @transform_1(%arg0: i32) -> (i32, i32) {
    %c0_i32 = arith.constant 0 : i32
    %c0_i32_0 = arith.constant 0 : i32
    %c0_i32_1 = arith.constant 0 : i32
    return %c0_i32, %c0_i32_0 : i32, i32
  }
  func.func @transform_2(%arg0: i32) -> (i32, i32) {
    %c0_i32 = arith.constant 0 : i32
    %c0_i32_0 = arith.constant 0 : i32
    %c0_i32_1 = arith.constant 0 : i32
    return %c0_i32, %c0_i32_0 : i32, i32
  }
  func.func @transform_3(%arg0: i32) -> (i32, i32) {
    %c0_i32 = arith.constant 0 : i32
    %c0_i32_0 = arith.constant 0 : i32
    %c0_i32_1 = arith.constant 0 : i32
    return %c0_i32, %c0_i32_0 : i32, i32
  }
  func.func @transform_4(%arg0: i32) -> (i32, i32) {
    %c0_i32 = arith.constant 0 : i32
    %c0_i32_0 = arith.constant 0 : i32
    %c0_i32_1 = arith.constant 0 : i32
    return %c0_i32, %c0_i32_0 : i32, i32
  }
  func.func @transform_5(%arg0: i32) -> (i32, i32) {
    %c0_i32 = arith.constant 0 : i32
    %c0_i32_0 = arith.constant 0 : i32
    %c0_i32_1 = arith.constant 0 : i32
    return %c0_i32, %c0_i32_0 : i32, i32
  }
  func.func @transform_6(%arg0: i32) -> (i32, i32) {
    %c0_i32 = arith.constant 0 : i32
    %c0_i32_0 = arith.constant 0 : i32
    %c0_i32_1 = arith.constant 0 : i32
    return %c0_i32, %c0_i32_0 : i32, i32
  }
  func.func @transform_7(%arg0: i32) -> (i32, i32) {
    %c0_i32 = arith.constant 0 : i32
    %c0_i32_0 = arith.constant 0 : i32
    return %arg0, %c0_i32 : i32, i32
  }
}

</mosaic_0001>

<bundles_post_ra>
// kernel: tpu_custom_call.1
= control target key start
LH: loop header
LB: loop body
LE: loop exit
PB: predicated region body
PF: predicated region fallthrough
CT: control target
= control target key end

     0   :  { %12 = vsyncpa [#allocation3], 0  ;;  %s635_s0 = inlined_call_operand.hbm [shape: f32[8,16], index: 0, kind: input, shape index: {}]   ;;  %s636_s1 = inlined_call_operand.hbm [shape: bf16[16,128], index: 1, kind: input, shape index: {}]   ;;  %s637_s2 = inlined_call_operand.vmem [shape: f32[1,128], index: 2, kind: input, shape index: {}]   ;;  %s638_s3 = inlined_call_operand.hbm [shape: bf16[128,128], index: 3, kind: input, shape index: {}]   ;;  %s639_s4 = inlined_call_operand.vmem [shape: f32[1,128], index: 4, kind: input, shape index: {}]   ;;  %s640_s5 = inlined_call_operand.hbm [shape: bf16[128,128], index: 5, kind: input, shape index: {}]   ;;  %s641_s6 = inlined_call_operand.vmem [shape: f32[1,128], index: 6, kind: input, shape index: {}]   ;;  %s642_s7 = inlined_call_operand.hbm [shape: bf16[8,128], index: 7, kind: output, shape index: {}]  }
   0x1   :  { %13 = vsyncpa [#allocation6], 0 }
   0x2   :  { %14 = vsyncpa [#allocation9], 0 }
   0x3   :  { %15 = vsyncpa [#allocation4], 0  ;;  %s33_s26 = sshll.u32 %s636_s1, 4  ;;  %s34_s26 = int_to_ptr.hbm [resolvable:$true] %s33_s26 }
   0x4   :  { %19 = vsyncadd [#allocation3], 128  ;;  %s550_s27 = smov [#allocation5]   ;;  %s20_s8 = sshll.u32 %s635_s0, 4  ;;  %s21_s8 = int_to_ptr.hbm [resolvable:$true] %s20_s8 }
   0x5   :  { %s35_s28 = sshll.u32 %s550_s27, 4  ;;  %s551_s9 = smov 64   ;;  %s36_s28 = int_to_ptr.vmem [resolvable:$true] %s35_s28 }
   0x6   :  { %s552_s10 = smov 4   ;;  %s553_s11 = smov [#allocation2]  }
   0x7   :  { %41 = dma.hbm_to_vmem [thread:$0]  %s34_s26, 128, %s36_s28, [#allocation6], %s551_s9, %s551_s9, %s552_s10  }
   0x8   :  { %s22_s12 = sshll.u32 %s553_s11, 4  ;;  %s554_s1 = smov 128   ;;  %s23_s12 = int_to_ptr.vmem [resolvable:$true] %s22_s12 }
   0x9   :  { %s555_s13 = smov 8   ;;  %s48_s16 = sshll.u32 %s638_s3, 4  ;;  %s49_s16 = int_to_ptr.hbm [resolvable:$true] %s48_s16 }
   0xa   :  { %28 = dma.hbm_to_vmem [thread:$0]  %s21_s8, 128, %s23_s12, [#allocation3], %s554_s1, %s554_s1, %s555_s13  }
   0xb   :  { %s556_s17 = smov [#allocation7]   ;;  %s63_s20 = sshll.u32 %s640_s5, 4  ;;  %s64_s20 = int_to_ptr.hbm [resolvable:$true] %s63_s20 }
   0xc   :  { %s50_s0 = sshll.u32 %s556_s17, 4  ;;  %s557_s21 = smov [#allocation8]   ;;  %s51_s0 = int_to_ptr.vmem [resolvable:$true] %s50_s0 }
   0xd   :  { %56 = dma.hbm_to_vmem [thread:$0]  %s49_s16, 1024, %s51_s0, [#allocation6], %s551_s9, %s551_s9, %s552_s10  }
   0xe   :  { %s65_s22 = sshll.u32 %s557_s21, 4  ;;  %s66_s22 = int_to_ptr.vmem [resolvable:$true] %s65_s22 }
   0xf   :  { %71 = dma.hbm_to_vmem [thread:$0]  %s64_s20, 1024, %s66_s22, [#allocation9], %s551_s9, %s551_s9, %s552_s10  }
  0x10   :  { %542 = dma.done.wait [#allocation3], 256  }
  0x11   :  { %543 = vsyncadd [#allocation3], 4294967040 }
  0x12   :  { %544 = dma.done.wait [#allocation6], 1152  }
  0x13   :  { %545 = vsyncadd [#allocation6], 4294966144 }
  0x14   :  { %546 = dma.done.wait [#allocation9], 1024  }
  0x15   :  { %547 = vsyncadd [#allocation9], 4294966272  ;;  %v388_v0 = vld [vmem:[#allocation5] sm:$0xff]  ;;  %v91_v1 = vld [vmem:[#allocation2] sm:$0xff]  ;;  %vm106_vm0 = vcmask 130048  }
  0x16   :  { %v92_v2 = vld [vmem:[#allocation2 + $0x8] sm:$0xff]  ;;  %v396_v4 = vld [vmem:[#allocation7 + $0x38] sm:$0xff]  ;;  %117 = vmatpush.bf16.msra.mxu0 %v388_v0  ;;  %v394_v6 = vld [vmem:[#allocation7 + $0x28] sm:$0xff] }
  0x17   :  { %v93_v3 = vpack.c.bf16 %v92_v2, %v91_v1  ;;  %195 = vmatpush.bf16.msra.mxu1 %v396_v4  ;;  %v395_v5 = vld [vmem:[#allocation7 + $0x30] sm:$0xff]  ;;  %v393_v7 = vld [vmem:[#allocation7 + $0x20] sm:$0xff]  ;;  %v392_v8 = vld [vmem:[#allocation7 + $0x18] sm:$0xff] }
  0x18   :  { %v391_v9 = vld [vmem:[#allocation7 + $0x10] sm:$0xff]  ;;  %v390_v10 = vld [vmem:[#allocation7 + $0x8] sm:$0xff]  ;;  %v389_v11 = vld [vmem:[#allocation7] sm:$0xff] }
  0x19   :  { %323 = vmatmul.msk.bf16.vlgmr.msra.gmra.mxu0 %vm106_vm0, %v93_v3  ;;  %v404_v12 = vld [vmem:[#allocation8 + $0x38] sm:$0xff]  ;;  %v403_v13 = vld [vmem:[#allocation8 + $0x30] sm:$0xff]  ;;  %v402_v14 = vld [vmem:[#allocation8 + $0x28] sm:$0xff] }
  0x1a   :  { %280 = vmatpush.bf16.msra.mxu2 %v404_v12  ;;  %v401_v15 = vld [vmem:[#allocation8 + $0x20] sm:$0xff]  ;;  %v419_v17 = vld [vmem:[%s637_s2] ss:$0 sm:$0xff]  ;;  %v400_v24 = vld [vmem:[#allocation8 + $0x18] sm:$0xff] }
  0x1b   :  { %196 = vmatpush.bf16.msra.mxu1 %v395_v5  ;;  %v399_v25 = vld [vmem:[#allocation8 + $0x10] sm:$0xff]  ;;  %v398_v26 = vld [vmem:[#allocation8 + $0x8] sm:$0xff]  ;;  %v397_v27 = vld [vmem:[#allocation8] sm:$0xff] }
  0x1c   :  { %v420_v29 = vld [vmem:[%s639_s4] ss:$0 sm:$0xff] }
  0x1d   :  { %v421_v37 = vld [vmem:[%s641_s6] ss:$0 sm:$0xff] }
  0x1e   :  { %281 = vmatpush.bf16.msra.mxu2 %v403_v13 }
  0x1f   :  { %197 = vmatpush.bf16.msra.mxu1 %v394_v6 }
  0x22   :  { %282 = vmatpush.bf16.msra.mxu2 %v402_v14 }
  0x23   :  { %198 = vmatpush.bf16.msra.mxu1 %v393_v7 }
  0x26   :  { %283 = vmatpush.bf16.msra.mxu2 %v401_v15 }
  0x27   :  { %199 = vmatpush.bf16.msra.mxu1 %v392_v8 }
  0x2a   :  { %284 = vmatpush.bf16.msra.mxu2 %v400_v24 }
  0x2b   :  { %200 = vmatpush.bf16.msra.mxu1 %v391_v9 }
  0x2e   :  { %285 = vmatpush.bf16.msra.mxu2 %v399_v25 }
  0x2f   :  { %201 = vmatpush.bf16.msra.mxu1 %v390_v10 }
  0x32   :  { %286 = vmatpush.bf16.msra.mxu2 %v398_v26 }
  0x33   :  { %202 = vmatpush.bf16.msra.mxu1 %v389_v11 }
  0x36   :  { %287 = vmatpush.bf16.msra.mxu2 %v397_v27 }
  0x96   :  { %v119_v16 = vpop.f32.mrf.mxu0 }
  0x97   :  { %v120_v18 = vadd.f32 %v419_v17, %v119_v16 }
  0x99   :  { %v124_v21 = vmax.f32 %v120_v18, 0.0 }
  0x9e   :  { %v121_v19 = vpop.f32.mrf.mxu0 }
  0x9f   :  { %v122_v20 = vadd.f32 %v419_v17, %v121_v19 }
  0xa1   :  { %v125_v22 = vmax.f32 %v122_v20, 0.0 }
  0xa3   :  { %v126_v23 = vpack.c.bf16 %v125_v22, %v124_v21 }
  0xa5   :  { %203 = vmatmul.bf16.vlgmr.msra.gmra.mxu1 %v126_v23 }
 0x122   :  { %v204_v28 = vpop.f32.mrf.mxu1 }
 0x123   :  { %v205_v30 = vadd.f32 %v420_v29, %v204_v28 }
 0x125   :  { %v209_v33 = vmax.f32 %v205_v30, 0.0 }
 0x12a   :  { %v206_v31 = vpop.f32.mrf.mxu1 }
 0x12b   :  { %v207_v32 = vadd.f32 %v420_v29, %v206_v31 }
 0x12d   :  { %v210_v34 = vmax.f32 %v207_v32, 0.0 }
 0x12f   :  { %v211_v35 = vpack.c.bf16 %v210_v34, %v209_v33 }
 0x131   :  { %288 = vmatmul.bf16.vlgmr.msra.gmra.mxu2 %v211_v35 }
 0x1b4   :  { %v289_v36 = vpop.f32.mrf.mxu2 }
 0x1b5   :  { %v290_v39 = vadd.f32 %v421_v37, %v289_v36 }
 0x1bc   :  { %v291_v38 = vpop.f32.mrf.mxu2 }
 0x1bd   :  { %v292_v40 = vadd.f32 %v421_v37, %v291_v38 }
 0x1bf   :  { %v408_v41 = vpack.c.bf16 %v292_v40, %v290_v39 }
 0x1c1   :  { %409 = vst [vmem:[#allocation10] sm:$0xff] %v408_v41  }
 0x1c2   :  { %301 = vsyncadd [#allocation4], 64  ;;  %s304_s27 = sshll.u32 %s642_s7, 4  ;;  %s558_s28 = smov [#allocation10]   ;;  %s305_s27 = int_to_ptr.hbm [resolvable:$true] %s304_s27 }
 0x1c3   :  { %s302_s29 = sshll.u32 %s558_s28, 4  ;;  %s303_s29 = int_to_ptr.vmem [resolvable:$true] %s302_s29 }
 0x1c4   :  { %310 = dma.vmem_to_hbm [thread:$0]  %s303_s29, 64, %s305_s27, [#allocation4], %s551_s9, %s551_s9, %s552_s10  }
 0x1c5   :  { %548 = dma.done.wait [#allocation4], 128  }
 0x1c6   :  { %549 = vsyncadd [#allocation4], 4294967168 }
 0x1c7   :  { %315 = vsyncpa [#allocation3], 1 }
 0x1c8   :  { %316 = vsyncpa [#allocation6], 1 }
 0x1c9   :  { %317 = vsyncpa [#allocation9], 1 }
 0x1ca   :  { %318 = vsyncpa [#allocation4], 1 }

</bundles_post_ra>
